<compile_context>
chip_gen: v7x
topology: tpu7x:2x2x1
jax: 0.10.0
libtpu: 0.0.40
codegen_flags: <defaults>
</compile_context>

<pallas_src>
import functools
import math

import jax
import jax.numpy as jnp
from jax.experimental import pallas as pl
from jax.experimental.pallas import tpu as pltpu

_EPS = 1e-5
_NEG_SLOPE = 0.2
_LANE = 128


def _round_up(n, m):
    return ((n + m - 1) // m) * m


def _pad_axis(a, axis, target):
    pad = target - a.shape[axis]
    if pad == 0:
        return a
    widths = [(0, 0)] * a.ndim
    widths[axis] = (0, pad)
    return jnp.pad(a, widths)


# -----------------------------------------------------------------------------
# One-time parameter preparation (keep OUT of the per-call forward).
# -----------------------------------------------------------------------------
def prepare_params(params, matmul_dtype=jnp.bfloat16):
    """Pad only the output feature dim to 128 lanes and cast matmul operands.

    gamma4/beta4 MUST be zero-padded: scale = gamma * rsqrt(var + eps) == 0 in the
    padded columns, keeping them exactly zero (padding gamma with ones would produce
    rsqrt(eps)-scaled garbage).  Linear biases are intentionally omitted -- they cancel
    exactly against training-mode BN mean subtraction.
    """
    d_out = params["gamma4"].shape[-1]
    dp_out = _round_up(d_out, _LANE)
    return {
        "w1": params["w1"].astype(matmul_dtype),                         # (D_in, H)
        "gamma1": params["gamma1"].astype(jnp.float32),                  # (1, H)
        "beta1": params["beta1"].astype(jnp.float32),
        "w4": _pad_axis(params["w4"], 1, dp_out).astype(matmul_dtype),   # (H, Dp_out)
        "gamma4": _pad_axis(params["gamma4"], 1, dp_out).astype(jnp.float32),
        "beta4": _pad_axis(params["beta4"], 1, dp_out).astype(jnp.float32),
    }


# -----------------------------------------------------------------------------
# Small-batch fused kernel (everything VMEM-resident, grid=()).
# -----------------------------------------------------------------------------
def _bn_leaky_fused(h, gamma, beta):
    """Training-mode BatchNorm1d (batch stats, biased var) fused to one scale+shift,
    then LeakyReLU(0.2) as a single max.  All math in f32."""
    mean = jnp.mean(h, axis=0, keepdims=True)
    centered = h - mean
    var = jnp.mean(centered * centered, axis=0, keepdims=True)
    scale = gamma * jax.lax.rsqrt(var + _EPS)     # rsqrt -> EUP slot
    shift = beta - mean * scale
    h = h * scale + shift
    return jnp.maximum(h, _NEG_SLOPE * h)


def _input_block_kernel(x_ref, w1_ref, g1_ref, be1_ref, w4_ref, g4_ref, be4_ref,
                        out_ref):
    # Cast x to the weight dtype in-kernel (free on the VPU) -> no wrapper cast op.
    h = jnp.dot(x_ref[...].astype(w1_ref.dtype), w1_ref[...],
                preferred_element_type=jnp.float32)
    h = _bn_leaky_fused(h, g1_ref[...], be1_ref[...])
    o = jnp.dot(h.astype(w4_ref.dtype), w4_ref[...],
                preferred_element_type=jnp.float32)
    o = _bn_leaky_fused(o, g4_ref[...], be4_ref[...])
    out_ref[...] = o.astype(out_ref.dtype)


@functools.partial(jax.jit, static_argnames=("d_out", "slice_output"))
def input_block_forward(x, prep, *, d_out, slice_output=True):
    """Single-shot fused forward for small batches.

    x: (B, D_in) float32.  prep: output of prepare_params().  Returns (B, d_out) f32,
    or the lane-padded (B, Dp_out) array (extra columns exactly zero) if
    slice_output=False (saves one XLA op per call for tolerant consumers).
    """
    B, d_in = x.shape
    hdim = prep["gamma1"].shape[-1]
    dp_out = prep["gamma4"].shape[-1]

    full = lambda shape: pl.BlockSpec(shape, lambda: (0,) * len(shape),
                                      memory_space=pltpu.VMEM)

    out = pl.pallas_call(
        _input_block_kernel,
        out_shape=jax.ShapeDtypeStruct((B, dp_out), jnp.float32),
        grid=(),
        in_specs=[
            full((B, d_in)),
            full((d_in, hdim)), full((1, hdim)), full((1, hdim)),
            full((hdim, dp_out)), full((1, dp_out)), full((1, dp_out)),
        ],
        out_specs=full((B, dp_out)),
    )(x, prep["w1"], prep["gamma1"], prep["beta1"],
      prep["w4"], prep["gamma4"], prep["beta4"])

    if slice_output:
        out = out[:, :d_out]
    return out


# -----------------------------------------------------------------------------
# Large-batch batch-tiled path: 3 passes, two-pass BN statistics.
# -----------------------------------------------------------------------------
def _stats1_kernel(x_ref, w1_ref, h1_ref, s1_ref, ss1_ref):
    """Pass 1: h1 = x @ w1; stash h1; accumulate batch sum / sum-of-squares."""
    h = jnp.dot(x_ref[...].astype(w1_ref.dtype), w1_ref[...],
                preferred_element_type=jnp.float32)
    h1_ref[...] = h

    @pl.when(pl.program_id(0) == 0)
    def _():
        s1_ref[...] = jnp.zeros_like(s1_ref)
        ss1_ref[...] = jnp.zeros_like(ss1_ref)

    s1_ref[...] += jnp.sum(h, axis=0, keepdims=True)
    ss1_ref[...] += jnp.sum(h * h, axis=0, keepdims=True)


def _scale_shift_from_stats(s, ss, gamma, beta, inv_b):
    mean = s * inv_b
    var = jnp.maximum(ss * inv_b - mean * mean, 0.0)
    scale = gamma * jax.lax.rsqrt(var + _EPS)
    shift = beta - mean * scale
    return scale, shift


def _stats2_kernel(h1_ref, s1_ref, ss1_ref, g1_ref, be1_ref, w4_ref,
                   o_ref, s4_ref, ss4_ref, *, inv_b):
    """Pass 2: bn1 apply + LeakyReLU + fc4; stash o; accumulate o batch stats."""
    scale, shift = _scale_shift_from_stats(s1_ref[...], ss1_ref[...],
                                           g1_ref[...], be1_ref[...], inv_b)
    h = h1_ref[...] * scale + shift
    h = jnp.maximum(h, _NEG_SLOPE * h)
    o = jnp.dot(h.astype(w4_ref.dtype), w4_ref[...],
                preferred_element_type=jnp.float32)
    o_ref[...] = o

    @pl.when(pl.program_id(0) == 0)
    def _():
        s4_ref[...] = jnp.zeros_like(s4_ref)
        ss4_ref[...] = jnp.zeros_like(ss4_ref)

    s4_ref[...] += jnp.sum(o, axis=0, keepdims=True)
    ss4_ref[...] += jnp.sum(o * o, axis=0, keepdims=True)


def _apply4_kernel(o_ref, s4_ref, ss4_ref, g4_ref, be4_ref, out_ref, *, inv_b):
    """Pass 3: bn4 apply + LeakyReLU.  No cross-tile dependence -> 'parallel' axis."""
    scale, shift = _scale_shift_from_stats(s4_ref[...], ss4_ref[...],
                                           g4_ref[...], be4_ref[...], inv_b)
    o = o_ref[...] * scale + shift
    out_ref[...] = jnp.maximum(o, _NEG_SLOPE * o).astype(out_ref.dtype)


@functools.partial(jax.jit, static_argnames=("d_out", "block_b", "slice_output"))
def input_block_forward_tiled(x, prep, *, d_out, block_b=256, slice_output=True):
    """Large-B forward: batch-tiled grid, resident weights, two-pass BN stats.

    block_b rows per tile (256-512 keeps double-buffered activations + resident weights
    far under v7x's 64 MiB VMEM at these feature widths).  BN-stat passes accumulate
    into resident output refs over an 'arbitrary' batch axis; the final apply pass is
    'parallel' so v7x's second TensorCore is used.  No extra intermediate stores beyond
    the h1 / o stashes (v5e has a single vst slot).
    """
    B, d_in = x.shape
    hdim = prep["gamma1"].shape[-1]
    dp_out = prep["gamma4"].shape[-1]

    tb = min(block_b, B)
    # TODO(synk): ragged last tile (B % tb != 0) would need masked BN-sum contributions.
    assert B % tb == 0, "batch must be divisible by block_b"
    nb = B // tb
    inv_b = 1.0 / B

    row = lambda w: pl.BlockSpec((tb, w), lambda i: (i, 0))
    rep = lambda shape: pl.BlockSpec(shape, lambda i: (0,) * len(shape))

    # Pass 1: h1 + bn1 batch statistics (stats accumulate across tiles).
    h1, s1, ss1 = pl.pallas_call(
        _stats1_kernel,
        grid=(nb,),
        out_shape=(jax.ShapeDtypeStruct((B, hdim), jnp.float32),
                   jax.ShapeDtypeStruct((1, hdim), jnp.float32),
                   jax.ShapeDtypeStruct((1, hdim), jnp.float32)),
        in_specs=[row(d_in), rep((d_in, hdim))],
        out_specs=(row(hdim), rep((1, hdim)), rep((1, hdim))),
        compiler_params=pltpu.CompilerParams(dimension_semantics=("arbitrary",)),
    )(x, prep["w1"])

    # Pass 2: bn1 apply + LeakyReLU + fc4 + bn4 batch statistics.
    o, s4, ss4 = pl.pallas_call(
        functools.partial(_stats2_kernel, inv_b=inv_b),
        grid=(nb,),
        out_shape=(jax.ShapeDtypeStruct((B, dp_out), jnp.float32),
                   jax.ShapeDtypeStruct((1, dp_out), jnp.float32),
                   jax.ShapeDtypeStruct((1, dp_out), jnp.float32)),
        in_specs=[row(hdim), rep((1, hdim)), rep((1, hdim)),
                  rep((1, hdim)), rep((1, hdim)), rep((hdim, dp_out))],
        out_specs=(row(dp_out), rep((1, dp_out)), rep((1, dp_out))),
        compiler_params=pltpu.CompilerParams(dimension_semantics=("arbitrary",)),
    )(h1, s1, ss1, prep["gamma1"], prep["beta1"], prep["w4"])

    # Pass 3: bn4 apply + LeakyReLU (embarrassingly parallel over batch tiles).
    out = pl.pallas_call(
        functools.partial(_apply4_kernel, inv_b=inv_b),
        grid=(nb,),
        out_shape=jax.ShapeDtypeStruct((B, dp_out), jnp.float32),
        in_specs=[row(dp_out), rep((1, dp_out)), rep((1, dp_out)),
                  rep((1, dp_out)), rep((1, dp_out))],
        out_specs=row(dp_out),
        compiler_params=pltpu.CompilerParams(dimension_semantics=("parallel",)),
    )(o, s4, ss4, prep["gamma4"], prep["beta4"])

    if slice_output:
        out = out[:, :d_out]
    return out


# -----------------------------------------------------------------------------
# Parameter init (mirrors InputBlock.__init__) and pure-JAX reference.
# -----------------------------------------------------------------------------
def init_params(key, d_in, d_out):
    """kaiming_uniform_(a=0) weights (bound=sqrt(6/fan_in)), nn.Linear default biases
    (bound=1/sqrt(fan_in)), BatchNorm1d weight=1 / bias=0."""
    h = d_out // 2
    k1, k2, k3, k4 = jax.random.split(key, 4)

    bound_w1 = math.sqrt(6.0 / d_in)
    w1 = jax.random.uniform(k1, (h, d_in), jnp.float32, -bound_w1, bound_w1)
    bound_b1 = 1.0 / math.sqrt(d_in)
    b1 = jax.random.uniform(k2, (h,), jnp.float32, -bound_b1, bound_b1)

    bound_w4 = math.sqrt(6.0 / h)
    w4 = jax.random.uniform(k3, (d_out, h), jnp.float32, -bound_w4, bound_w4)
    bound_b4 = 1.0 / math.sqrt(h)
    b4 = jax.random.uniform(k4, (d_out,), jnp.float32, -bound_b4, bound_b4)

    return {
        "w1": jnp.transpose(w1),                    # (D_in, H)
        "b1": b1.reshape(1, h),                     # kept for the reference; cancels in BN
        "gamma1": jnp.ones((1, h), jnp.float32),
        "beta1": jnp.zeros((1, h), jnp.float32),
        "w4": jnp.transpose(w4),                    # (H, D_out)
        "b4": b4.reshape(1, d_out),                 # kept for the reference; cancels in BN
        "gamma4": jnp.ones((1, d_out), jnp.float32),
        "beta4": jnp.zeros((1, d_out), jnp.float32),
    }


def _reference(x, params):
    """Pure-JAX f32 reference with biases included -- matches the PyTorch forward
    (train-mode BN) and demonstrates the exact bias/BN cancellation."""
    def bn_leaky(h, g, b):
        mean = jnp.mean(h, axis=0, keepdims=True)
        var = jnp.mean((h - mean) ** 2, axis=0, keepdims=True)
        h = (h - mean) / jnp.sqrt(var + _EPS) * g + b
        return jnp.where(h >= 0, h, _NEG_SLOPE * h)

    h = x @ params["w1"] + params["b1"]
    h = bn_leaky(h, params["gamma1"], params["beta1"])
    o = h @ params["w4"] + params["b4"]
    return bn_leaky(o, params["gamma4"], params["beta4"])


if __name__ == "__main__":
    key = jax.random.PRNGKey(0)
    kx, kp, kx2 = jax.random.split(key, 3)

    D_IN, D_OUT = 32, 64            # InputBlock(input=32, output=64)
    params = init_params(kp, D_IN, D_OUT)

    prep_f32 = prepare_params(params, matmul_dtype=jnp.float32)   # exact path
    prep_bf16 = prepare_params(params, matmul_dtype=jnp.bfloat16)  # MXU-native default

    # --- small-batch fused path (shipped shape: B=8) ---
    B = 8
    x = jax.random.normal(kx, (B, D_IN), jnp.float32)
    ref = _reference(x, params)

    out = jax.block_until_ready(input_block_forward(x, prep_f32, d_out=D_OUT))
    assert out.shape == (B, D_OUT)
    assert jnp.allclose(out, ref, atol=1e-4, rtol=1e-4), "fused f32 path mismatch"

    out_bf16 = jax.block_until_ready(input_block_forward(x, prep_bf16, d_out=D_OUT))
    assert out_bf16.shape == (B, D_OUT)
    assert jnp.allclose(out_bf16, ref, atol=5e-2, rtol=5e-2), "fused bf16 path mismatch"

    # --- large-batch tiled path ---
    B2 = 512
    x2 = jax.random.normal(kx2, (B2, D_IN), jnp.float32)
    ref2 = _reference(x2, params)

    out2 = jax.block_until_ready(
        input_block_forward_tiled(x2, prep_f32, d_out=D_OUT, block_b=128))
    assert out2.shape == (B2, D_OUT)
    assert jnp.allclose(out2, ref2, atol=1e-3, rtol=1e-3), "tiled f32 path mismatch"

    out2_bf16 = jax.block_until_ready(
        input_block_forward_tiled(x2, prep_bf16, d_out=D_OUT, block_b=128))
    assert out2_bf16.shape == (B2, D_OUT)
    assert jnp.allclose(out2_bf16, ref2, atol=1e-1, rtol=1e-1), "tiled bf16 path mismatch"

    print("KERNEL_OK")
</pallas_src>

<mosaic_0001>
module attributes {stable_mosaic.version = 11 : i64} {
  func.func @_input_block_kernel(%arg0: memref<8x32xf32, #tpu.memory_space<vmem>>, %arg1: memref<32x32xf32, #tpu.memory_space<vmem>>, %arg2: memref<1x32xf32, #tpu.memory_space<vmem>>, %arg3: memref<1x32xf32, #tpu.memory_space<vmem>>, %arg4: memref<32x128xf32, #tpu.memory_space<vmem>>, %arg5: memref<1x128xf32, #tpu.memory_space<vmem>>, %arg6: memref<1x128xf32, #tpu.memory_space<vmem>>, %arg7: memref<8x128xf32, #tpu.memory_space<vmem>>) attributes {dimension_semantics = [], scalar_prefetch = 0 : i64, scratch_operands = 0 : i64, tpu.core_type = #tpu.core_type<tc>} {
    %c0 = arith.constant 0 : index
    %c0_0 = arith.constant 0 : index
    %0 = vector.load %arg0[%c0, %c0_0] : memref<8x32xf32, #tpu.memory_space<vmem>>, vector<8x32xf32>
    %c0_1 = arith.constant 0 : index
    %c0_2 = arith.constant 0 : index
    %1 = vector.load %arg1[%c0_1, %c0_2] : memref<32x32xf32, #tpu.memory_space<vmem>>, vector<32x32xf32>
    %cst = arith.constant dense<0.000000e+00> : vector<8x32xf32>
    %2 = tpu.matmul %0, %1, %cst {dimension_numbers = #tpu.dot_dimension_numbers<[1], [0], [0], [1], [0, 0, 1, 1], [], []>} : vector<8x32xf32>, vector<32x32xf32>, vector<8x32xf32> -> vector<8x32xf32>
    %c0_3 = arith.constant 0 : index
    %c0_4 = arith.constant 0 : index
    %3 = vector.load %arg2[%c0_3, %c0_4] : memref<1x32xf32, #tpu.memory_space<vmem>>, vector<1x32xf32>
    %c0_5 = arith.constant 0 : index
    %c0_6 = arith.constant 0 : index
    %4 = vector.load %arg3[%c0_5, %c0_6] : memref<1x32xf32, #tpu.memory_space<vmem>>, vector<1x32xf32>
    %cst_7 = arith.constant dense<0.000000e+00> : vector<32xf32>
    %5 = vector.multi_reduction <add>, %2, %cst_7 [0] : vector<8x32xf32> to vector<32xf32>
    %6 = vector.shape_cast %5 : vector<32xf32> to vector<1x32xf32>
    %cst_8 = arith.constant 8.000000e+00 : f32
    %7 = vector.broadcast %cst_8 : f32 to vector<1x32xf32>
    %8 = arith.divf %6, %7 : vector<1x32xf32>
    %9 = vector.broadcast %8 : vector<1x32xf32> to vector<8x32xf32>
    %10 = arith.subf %2, %9 : vector<8x32xf32>
    %11 = arith.mulf %10, %10 : vector<8x32xf32>
    %cst_9 = arith.constant dense<0.000000e+00> : vector<32xf32>
    %12 = vector.multi_reduction <add>, %11, %cst_9 [0] : vector<8x32xf32> to vector<32xf32>
    %13 = vector.shape_cast %12 : vector<32xf32> to vector<1x32xf32>
    %cst_10 = arith.constant 8.000000e+00 : f32
    %14 = vector.broadcast %cst_10 : f32 to vector<1x32xf32>
    %15 = arith.divf %13, %14 : vector<1x32xf32>
    %cst_11 = arith.constant 9.99999974E-6 : f32
    %16 = vector.broadcast %cst_11 : f32 to vector<1x32xf32>
    %17 = arith.addf %15, %16 : vector<1x32xf32>
    %18 = math.rsqrt %17 : vector<1x32xf32>
    %19 = arith.mulf %3, %18 : vector<1x32xf32>
    %20 = arith.mulf %8, %19 : vector<1x32xf32>
    %21 = arith.subf %4, %20 : vector<1x32xf32>
    %22 = vector.broadcast %19 : vector<1x32xf32> to vector<8x32xf32>
    %23 = arith.mulf %2, %22 : vector<8x32xf32>
    %24 = vector.broadcast %21 : vector<1x32xf32> to vector<8x32xf32>
    %25 = arith.addf %23, %24 : vector<8x32xf32>
    %cst_12 = arith.constant 2.000000e-01 : f32
    %26 = vector.broadcast %cst_12 : f32 to vector<8x32xf32>
    %27 = arith.mulf %26, %25 : vector<8x32xf32>
    %28 = arith.maximumf %25, %27 : vector<8x32xf32>
    %c0_13 = arith.constant 0 : index
    %c0_14 = arith.constant 0 : index
    %29 = vector.load %arg4[%c0_13, %c0_14] : memref<32x128xf32, #tpu.memory_space<vmem>>, vector<32x128xf32>
    %cst_15 = arith.constant dense<0.000000e+00> : vector<8x128xf32>
    %30 = tpu.matmul %28, %29, %cst_15 {dimension_numbers = #tpu.dot_dimension_numbers<[1], [0], [0], [1], [0, 0, 1, 1], [], []>} : vector<8x32xf32>, vector<32x128xf32>, vector<8x128xf32> -> vector<8x128xf32>
    %c0_16 = arith.constant 0 : index
    %c0_17 = arith.constant 0 : index
    %31 = vector.load %arg5[%c0_16, %c0_17] : memref<1x128xf32, #tpu.memory_space<vmem>>, vector<1x128xf32>
    %c0_18 = arith.constant 0 : index
    %c0_19 = arith.constant 0 : index
    %32 = vector.load %arg6[%c0_18, %c0_19] : memref<1x128xf32, #tpu.memory_space<vmem>>, vector<1x128xf32>
    %cst_20 = arith.constant dense<0.000000e+00> : vector<128xf32>
    %33 = vector.multi_reduction <add>, %30, %cst_20 [0] : vector<8x128xf32> to vector<128xf32>
    %34 = vector.shape_cast %33 : vector<128xf32> to vector<1x128xf32>
    %cst_21 = arith.constant 8.000000e+00 : f32
    %35 = vector.broadcast %cst_21 : f32 to vector<1x128xf32>
    %36 = arith.divf %34, %35 : vector<1x128xf32>
    %37 = vector.broadcast %36 : vector<1x128xf32> to vector<8x128xf32>
    %38 = arith.subf %30, %37 : vector<8x128xf32>
    %39 = arith.mulf %38, %38 : vector<8x128xf32>
    %cst_22 = arith.constant dense<0.000000e+00> : vector<128xf32>
    %40 = vector.multi_reduction <add>, %39, %cst_22 [0] : vector<8x128xf32> to vector<128xf32>
    %41 = vector.shape_cast %40 : vector<128xf32> to vector<1x128xf32>
    %cst_23 = arith.constant 8.000000e+00 : f32
    %42 = vector.broadcast %cst_23 : f32 to vector<1x128xf32>
    %43 = arith.divf %41, %42 : vector<1x128xf32>
    %cst_24 = arith.constant 9.99999974E-6 : f32
    %44 = vector.broadcast %cst_24 : f32 to vector<1x128xf32>
    %45 = arith.addf %43, %44 : vector<1x128xf32>
    %46 = math.rsqrt %45 : vector<1x128xf32>
    %47 = arith.mulf %31, %46 : vector<1x128xf32>
    %48 = arith.mulf %36, %47 : vector<1x128xf32>
    %49 = arith.subf %32, %48 : vector<1x128xf32>
    %50 = vector.broadcast %47 : vector<1x128xf32> to vector<8x128xf32>
    %51 = arith.mulf %30, %50 : vector<8x128xf32>
    %52 = vector.broadcast %49 : vector<1x128xf32> to vector<8x128xf32>
    %53 = arith.addf %51, %52 : vector<8x128xf32>
    %cst_25 = arith.constant 2.000000e-01 : f32
    %54 = vector.broadcast %cst_25 : f32 to vector<8x128xf32>
    %55 = arith.mulf %54, %53 : vector<8x128xf32>
    %56 = arith.maximumf %53, %55 : vector<8x128xf32>
    %c0_26 = arith.constant 0 : index
    %c0_27 = arith.constant 0 : index
    %57 = vector.load %arg7[%c0_26, %c0_27] : memref<8x128xf32, #tpu.memory_space<vmem>>, vector<8x128xf32>
    tpu.vector_store %arg7[%c0_26, %c0_27], %56 {strides = array<i32>} : memref<8x128xf32, #tpu.memory_space<vmem>>, vector<8x128xf32>,
    return
  }
}

</mosaic_0001>

<bundles_post_ra>
// kernel: input_block_forward.1
= control target key start
LH: loop header
LB: loop body
LE: loop exit
PB: predicated region body
PF: predicated region fallthrough
CT: control target
= control target key end

     0   :  { %12 = vsyncpa [#allocation3], 0  ;;  %s592_s0 = inlined_call_operand.hbm [shape: f32[8,32], index: 0, kind: input, shape index: {}]   ;;  %s593_s1 = inlined_call_operand.hbm [shape: f32[32,32], index: 1, kind: input, shape index: {}]   ;;  %s594_s2 = inlined_call_operand.vmem [shape: f32[1,32], index: 2, kind: input, shape index: {}]   ;;  %s595_s3 = inlined_call_operand.vmem [shape: f32[1,32], index: 3, kind: input, shape index: {}]   ;;  %s596_s4 = inlined_call_operand.hbm [shape: f32[32,128], index: 4, kind: input, shape index: {}]   ;;  %s597_s5 = inlined_call_operand.vmem [shape: f32[1,128], index: 5, kind: input, shape index: {}]   ;;  %s598_s6 = inlined_call_operand.vmem [shape: f32[1,128], index: 6, kind: input, shape index: {}]   ;;  %s599_s7 = inlined_call_operand.hbm [shape: f32[8,128], index: 7, kind: output, shape index: {}]  }
   0x1   :  { %13 = vsyncpa [#allocation6], 0 }
   0x2   :  { %14 = vsyncpa [#allocation4], 0  ;;  %s473_s24 = smov [#allocation5]   ;;  %s379_s28 = scalar_lea.hbm %s593_s1, 512 }
   0x3   :  { %s30_s25 = sshll.u32 %s473_s24, 4  ;;  %p380_p0 = scmp.ne.s32.totalorder %s593_s1, %s379_s28  ;;  %s31_s25 = int_to_ptr.vmem [resolvable:$true] %s30_s25 }
   0x4   :  { %p383_p1 = scmp.lt.u32.totalorder %s379_s28, %s593_s1 }
   0x6   :  { %p385_p2 = pnand %p383_p1, %p380_p0 }
   0x8   :  { %388 = shalt.err (!%p385_p2)
}
   0x9   :  { %s389_s10 = scalar_lea.vmem %s31_s25, 512  ;;  %p394_p4 = scmp.lt.s32.totalorder %s31_s25, %s31_s25 }
   0xa   :  { %p390_p3 = scmp.ne.s32.totalorder %s31_s25, %s389_s10  ;;  %p395_p5 = scmp.lt.s32.totalorder %s389_s10, %s389_s10 }
   0xc   :  { %p396_p6 = por %p395_p5, %p394_p4 }
   0xe   :  { %p397_p7 = pnand %p396_p6, %p390_p3 }
  0x10   :  { %400 = shalt.err (!%p397_p7)
}
  0x11   :  { %s474_s11 = smov 128   ;;  %s475_s12 = smov 8  }
  0x12   :  { %36 = dma.hbm_to_vmem [thread:$0]  %s593_s1, 512, %s31_s25, [#allocation6], %s474_s11, %s474_s11, %s475_s12  }
  0x13   :  { %s476_s15 = smov [#allocation2]   ;;  %s477_s17 = smov [#allocation7]  }
  0x14   :  { %s21_s16 = sshll.u32 %s476_s15, 4  ;;  %s46_s18 = sshll.u32 %s477_s17, 4  ;;  %s22_s16 = int_to_ptr.vmem [resolvable:$true] %s21_s16  ;;  %s47_s18 = int_to_ptr.vmem [resolvable:$true] %s46_s18 }
  0x15   :  { %s401_s21 = scalar_lea.hbm %s592_s0, 128 }
  0x16   :  { %p402_p8 = scmp.ne.s32.totalorder %s592_s0, %s401_s21  ;;  %p405_p9 = scmp.lt.u32.totalorder %s401_s21, %s592_s0 }
  0x18   :  { %p407_p10 = pnand %p405_p9, %p402_p8 }
  0x1a   :  { %410 = shalt.err (!%p407_p10)
}
  0x1b   :  { %s411_s1 = scalar_lea.vmem %s22_s16, 128  ;;  %p416_p12 = scmp.lt.s32.totalorder %s22_s16, %s22_s16 }
  0x1c   :  { %p412_p11 = scmp.ne.s32.totalorder %s22_s16, %s411_s1  ;;  %p417_p13 = scmp.lt.s32.totalorder %s411_s1, %s411_s1 }
  0x1e   :  { %p418_p0 = por %p417_p13, %p416_p12 }
  0x20   :  { %p419_p1 = pnand %p418_p0, %p412_p11 }
  0x22   :  { %422 = shalt.err (!%p419_p1)
}
  0x23   :  { %24 = dma.hbm_to_vmem [thread:$0]  %s592_s0, 128, %s22_s16, [#allocation3]  }
  0x24   :  { %s423_s30 = scalar_lea.hbm %s596_s4, 512 }
  0x25   :  { %p424_p2 = scmp.ne.s32.totalorder %s596_s4, %s423_s30  ;;  %p427_p3 = scmp.lt.u32.totalorder %s423_s30, %s596_s4 }
  0x27   :  { %p429_p4 = pnand %p427_p3, %p424_p2 }
  0x29   :  { %432 = shalt.err (!%p429_p4)
}
  0x2a   :  { %s433_s14 = scalar_lea.vmem %s47_s18, 512  ;;  %p438_p6 = scmp.lt.s32.totalorder %s47_s18, %s47_s18 }
  0x2b   :  { %p434_p5 = scmp.ne.s32.totalorder %s47_s18, %s433_s14  ;;  %p439_p7 = scmp.lt.s32.totalorder %s433_s14, %s433_s14 }
  0x2d   :  { %p440_p8 = por %p439_p7, %p438_p6 }
  0x2f   :  { %p441_p9 = pnand %p440_p8, %p434_p5 }
  0x31   :  { %444 = shalt.err (!%p441_p9)
}
  0x32   :  { %52 = dma.hbm_to_vmem [thread:$0]  %s596_s4, 512, %s47_s18, [#allocation6], %s474_s11, %s474_s11, %s475_s12  }
  0x33   :  { %467 = dma.done.wait [#allocation3], 128  }
  0x34   :  { %468 = vsyncadd [#allocation3], 4294967168 }
  0x35   :  { %469 = dma.done.wait [#allocation6], 1024  }
  0x36   :  { %470 = vsyncadd [#allocation6], 4294966272  ;;  %v478_v0 = vmov 0.0|0.0   ;;  %vm479_vm0 = vmmov 0   ;;  %v480_v1 = vmov 0.0   ;;  %v67_v2 = vld [vmem:[#allocation5] sm:$0xff]  ;;  %v172_v36 = vlaneseq }
  0x37   :  { %354 = vmatprep.subr.bf16.mxu0 %v478_v0  ;;  %340 = vmatprep.mubr.msk.f32.mxu0 %vm479_vm0, %v480_v1  ;;  %v68_v3 = vld [vmem:[#allocation5 + $0x8] sm:$0xff]  ;;  %v69_v4 = vld [vmem:[#allocation5 + $0x10] sm:$0xff]  ;;  %v70_v6 = vld [vmem:[#allocation5 + $0x18] sm:$0xff]  ;;  %vm71_vm1 = vcmask 261120   ;;  %s481_s19 = smov [#allocation8]  }
  0x38   :  { %360 = vmatprep.subr.bf16.mxu1 %v478_v0  ;;  %351 = vmatprep.mubr.msk.f32.mxu1 %vm479_vm0, %v480_v1  ;;  %v355_v5 = vpack.c.bf16 %v68_v3, %v67_v2  ;;  %v358_v7 = vpack.c.bf16 %v70_v6, %v69_v4  ;;  %v66_v8 = vld [vmem:[#allocation2] sm:$0xff]  ;;  %v187_v9 = vld [vmem:[#allocation7] sm:$0xff]  ;;  %v188_v10 = vld [vmem:[#allocation7 + $0x8] sm:$0xff]  ;;  %v173_v37 = vshrl.u32 %v172_v36, 7  ;;  %s310_s20 = sshll.u32 %s481_s19, 4  ;;  %s311_s20 = int_to_ptr.vmem [resolvable:$true] %s310_s20 }
  0x39   :  { %v361_v11 = vpack.c.bf16 %v188_v10, %v187_v9  ;;  %v189_v12 = vld [vmem:[#allocation7 + $0x10] sm:$0xff]  ;;  %v190_v13 = vld [vmem:[#allocation7 + $0x18] sm:$0xff]  ;;  %s445_s21 = scalar_lea.vmem %s311_s20, 128  ;;  %p450_p11 = scmp.lt.s32.totalorder %s311_s20, %s311_s20 }
  0x3a   :  { %356 = vmatpush3.bf16.msra.mxu0 %v355_v5  ;;  %v364_v14 = vpack.c.bf16 %v190_v13, %v189_v12  ;;  %v145_v38 = vld [vmem:[%s594_s2] sm:$0x1]  ;;  %v174_v39 = vsub.s32 0, %v173_v37  ;;  %p446_p10 = scmp.ne.s32.totalorder %s311_s20, %s445_s21  ;;  %p451_p12 = scmp.lt.s32.totalorder %s445_s21, %s445_s21 }
  0x3b   :  { %357 = vmatprep.subr.bf16.mxu0 %v478_v0  ;;  %362 = vmatpush3.bf16.msra.mxu1 %v361_v11  ;;  %v146_v42 = vld [vmem:[%s595_s3] sm:$0x1] }
  0x3c   :  { %363 = vmatprep.subr.bf16.mxu1 %v478_v0  ;;  %v264_v6 = vld [vmem:[%s597_s5] sm:$0x1]  ;;  %p452_p13 = por %p451_p12, %p450_p11 }
  0x3d   :  { %v265_v9 = vld [vmem:[%s598_s6] sm:$0x1] }
  0x3e   :  { %359 = vmatpush3.bf16.msra.mxu0 %v358_v7  ;;  %p453_p0 = pnand %p452_p13, %p446_p10 }
  0x3f   :  { %365 = vmatpush3.bf16.msra.mxu1 %v364_v14 }
  0x41   :  { %341 = vmatmul.mubr.msk.f32.vlgmr.msra.gmra.mrb[0].mxu0 %vm71_vm1, %v66_v8 }
 0x114   :  { %v141_v15 = vpop.f32.mrb[0].mxu0 }
 0x115   :  { %v147_v16 = vsel %vm71_vm1, %v141_v15, 0.0  ;;  %v342_v17 = vpop.f32.mrb[1].mxu0 }
 0x116   :  { %v148_v18 = vrot.slane %v147_v16, 4 }
 0x118   :  { %v149_v19 = vadd.f32 %v148_v18, %v147_v16 }
 0x11a   :  { %v150_v20 = vrot.slane %v149_v19, 2 }
 0x11c   :  { %v151_v21 = vadd.f32 %v150_v20, %v149_v19 }
 0x11e   :  { %v152_v22 = vrot.slane %v151_v21, 1 }
 0x120   :  { %v153_v23 = vadd.f32 %v152_v22, %v151_v21 }
 0x122   :  { %v155_v24 = vmul.f32 0.125, %v153_v23 }
 0x124   :  { %v156_v25 = vsub.f32 %v141_v15, %v155_v24 }
 0x126   :  { %v157_v26 = vmul.f32 %v156_v25, %v156_v25 }
 0x128   :  { %v158_v27 = vsel %vm71_vm1, %v157_v26, 0.0 }
 0x129   :  { %v159_v28 = vrot.slane %v158_v27, 4 }
 0x12b   :  { %v160_v29 = vadd.f32 %v159_v28, %v158_v27 }
 0x12d   :  { %v161_v30 = vrot.slane %v160_v29, 2 }
 0x12f   :  { %v162_v31 = vadd.f32 %v161_v30, %v160_v29 }
 0x131   :  { %v163_v32 = vrot.slane %v162_v31, 1 }
 0x133   :  { %v164_v33 = vadd.f32 %v163_v32, %v162_v31 }
 0x135   :  { %v165_v34 = vmul.f32 0.125, %v164_v33 }
 0x137   :  { %v166_v35 = vadd.f32 1e-05, %v165_v34 }
 0x139   :  { %375 = vrsqrt.f32 %v166_v35 }
 0x143   :  { %v376_v40 = vpop.eup %375 }
 0x144   :  { %v168_v41 = vmul.f32 %v376_v40, %v145_v38 }
 0x146   :  { %v169_v43 = vmul.f32 %v168_v41, %v155_v24  ;;  %v175_v44 = vrot.slane %v168_v41, %v174_v39 }
 0x148   :  { %v170_v45 = vsub.f32 %v146_v42, %v169_v43  ;;  %v177_v46 = vmul.f32 %v175_v44, %v141_v15 }
 0x14a   :  { %v182_v47 = vrot.slane %v170_v45, %v174_v39 }
 0x14c   :  { %v184_v48 = vadd.f32 %v182_v47, %v177_v46 }
 0x14e   :  { %v185_v49 = vmul.f32 0.2, %v184_v48 }
 0x150   :  { %v186_v50 = vmax.f32 %v184_v48, %v185_v49 }
 0x152   :  { %352 = vmatmul.mubr.msk.f32.vlgmr.msra.gmra.mrb[0].mxu1 %vm71_vm1, %v186_v50 }
 0x225   :  { %v260_v51 = vpop.f32.mrb[0].mxu1 }
 0x226   :  { %v266_v52 = vrot.slane %v260_v51, 4  ;;  %v353_v53 = vpop.f32.mrb[1].mxu1 }
 0x228   :  { %v267_v54 = vadd.f32 %v266_v52, %v260_v51 }
 0x22a   :  { %v268_v55 = vrot.slane %v267_v54, 2 }
 0x22c   :  { %v269_v56 = vadd.f32 %v268_v55, %v267_v54 }
 0x22e   :  { %v270_v57 = vrot.slane %v269_v56, 1 }
 0x230   :  { %v271_v58 = vadd.f32 %v270_v57, %v269_v56 }
 0x232   :  { %v272_v59 = vmul.f32 0.125, %v271_v58 }
 0x234   :  { %v273_v60 = vsub.f32 %v260_v51, %v272_v59 }
 0x236   :  { %v274_v61 = vmul.f32 %v273_v60, %v273_v60 }
 0x238   :  { %v275_v62 = vrot.slane %v274_v61, 4 }
 0x23a   :  { %v276_v63 = vadd.f32 %v275_v62, %v274_v61 }
 0x23c   :  { %v277_v0 = vrot.slane %v276_v63, 2 }
 0x23e   :  { %v278_v1 = vadd.f32 %v277_v0, %v276_v63 }
 0x240   :  { %v279_v2 = vrot.slane %v278_v1, 1 }
 0x242   :  { %v280_v3 = vadd.f32 %v279_v2, %v278_v1 }
 0x244   :  { %v281_v4 = vmul.f32 0.125, %v280_v3 }
 0x246   :  { %v282_v5 = vadd.f32 1e-05, %v281_v4 }
 0x248   :  { %377 = vrsqrt.f32 %v282_v5 }
 0x252   :  { %v378_v7 = vpop.eup %377 }
 0x253   :  { %v284_v8 = vmul.f32 %v378_v7, %v264_v6 }
 0x255   :  { %v285_v10 = vmul.f32 %v284_v8, %v272_v59  ;;  %v291_v11 = vrot.slane %v284_v8, %v174_v39 }
 0x257   :  { %v286_v12 = vsub.f32 %v265_v9, %v285_v10  ;;  %v293_v13 = vmul.f32 %v291_v11, %v260_v51 }
 0x259   :  { %v298_v14 = vrot.slane %v286_v12, %v174_v39 }
 0x25b   :  { %v300_v15 = vadd.f32 %v298_v14, %v293_v13 }
 0x25d   :  { %v301_v16 = vmul.f32 0.2, %v300_v15 }
 0x25f   :  { %v302_v17 = vmax.f32 %v300_v15, %v301_v16 }
 0x261   :  { %303 = vst [vmem:[#allocation8] sm:$0xff] %v302_v17 }
 0x262   :  { %456 = shalt.err (!%p453_p0)
}
 0x263   :  { %s457_s22 = scalar_lea.hbm %s599_s7, 128 }
 0x264   :  { %p458_p1 = scmp.ne.s32.totalorder %s599_s7, %s457_s22  ;;  %p461_p2 = scmp.lt.u32.totalorder %s457_s22, %s599_s7 }
 0x266   :  { %p463_p3 = pnand %p461_p2, %p458_p1 }
 0x268   :  { %466 = shalt.err (!%p463_p3)
}
 0x269   :  { %313 = dma.vmem_to_hbm [thread:$0]  %s311_s20, 128, %s599_s7, [#allocation4]  }
 0x26a   :  { %471 = dma.done.wait [#allocation4], 128  }
 0x26b   :  { %472 = vsyncadd [#allocation4], 4294967168 }
 0x26c   :  { %317 = vsyncpa [#allocation3], 1 }
 0x26d   :  { %318 = vsyncpa [#allocation6], 1 }
 0x26e   :  { %319 = vsyncpa [#allocation4], 1 }

</bundles_post_ra>
